<compile_context>
chip_gen: v7x
topology: tpu7x:2x2x1
jax: 0.10.0
libtpu: 0.0.40
codegen_flags: <defaults>
</compile_context>

<pallas_src>
import functools

import jax
import jax.numpy as jnp
from jax.experimental import pallas as pl
from jax.experimental.pallas import tpu as pltpu


def _label_smoothing_kernel(pred_ref, tgt_ref, out_ref, acc_ref, *,
                            confidence, smoothing, n_valid, tile_batch,
                            blocks_per_split):
    p = pl.program_id(0)   # megacore split (parallel)
    i = pl.program_id(1)   # batch tile within the split (arbitrary; carries acc)

    @pl.when(i == 0)
    def _():
        acc_ref[...] = jnp.zeros_like(acc_ref)

    logits = pred_ref[...].astype(jnp.float32)                 # (TB, C)
    tb, c = logits.shape

    # Row-wise log-sum-exp (numerically stable); log-softmax never built.
    m = jnp.max(logits, axis=-1, keepdims=True)                 # (TB, 1)
    sumexp = jnp.sum(jnp.exp(logits - m), axis=-1, keepdims=True)
    lse = m + jnp.log(sumexp)                                   # (TB, 1)

    # logits[row, target[row]] via one compare+select pass (no one_hot /
    # scatter; MXU deliberately unused).
    tgt = tgt_ref[...]                                          # (TB, 1) int32
    class_ids = jax.lax.broadcasted_iota(jnp.int32, (tb, c), 1)
    tgt_logit = jnp.sum(jnp.where(class_ids == tgt, logits, 0.0),
                        axis=-1, keepdims=True)                 # (TB, 1)
    row_sum = jnp.sum(logits, axis=-1, keepdims=True)           # (TB, 1)

    # loss_i = lse - confidence*logit_tgt - (s/C)*row_sum   (since conf+s==1)
    per_row = lse - confidence * tgt_logit - (smoothing / c) * row_sum

    # Mask rows that are batch padding.
    block_idx = p * blocks_per_split + i
    row_ids = block_idx * tile_batch + jax.lax.broadcasted_iota(
        jnp.int32, (tb, 1), 0)
    per_row = jnp.where(row_ids < n_valid, per_row, 0.0)

    # Lane-resident accumulation (pure VPU work each step).
    acc_ref[...] += per_row

    @pl.when(i == pl.num_programs(1) - 1)
    def _():
        # One cross-sublane reduce per core; wrapper sums per-core partials
        # and divides by N.  Output kept lane-dense (8, 128).
        out_ref[...] = jnp.full((8, 128), jnp.sum(acc_ref[...]),
                                dtype=jnp.float32)


def label_smoothing_loss(pred, target, *, smoothing=0.1, tile_batch=None):
    """pred: (N, C) float logits, target: (N,) int labels -> scalar loss."""
    n, c = pred.shape
    confidence = 1.0 - smoothing

    # Batch tile sized so the pred block is ~4 MiB (HBM-bandwidth-bound
    # kernel); multiple of 8 sublanes, capped at 2048 rows and at the
    # (rounded-up) batch so tiny problems don't over-pad.
    if tile_batch is None:
        bytes_per_row = c * jnp.dtype(pred.dtype).itemsize
        target_block_bytes = 4 * 1024 * 1024
        tile_batch = max(8, min(target_block_bytes // max(bytes_per_row, 1),
                                2048))
        tile_batch = max(8, (tile_batch // 8) * 8)
        n_up8 = ((n + 7) // 8) * 8
        tile_batch = min(tile_batch, n_up8)
    assert tile_batch % 8 == 0

    # 2-TC split on v7x; skip the second (all-padding) split for tiny batches.
    num_splits = 2 if n > tile_batch else 1
    chunk = num_splits * tile_batch
    n_pad = ((n + chunk - 1) // chunk) * chunk
    blocks_per_split = n_pad // chunk

    pred_p = jnp.pad(pred, ((0, n_pad - n), (0, 0)))
    tgt_p = jnp.pad(target.astype(jnp.int32), (0, n_pad - n)).reshape(n_pad, 1)

    kernel = functools.partial(
        _label_smoothing_kernel,
        confidence=confidence,
        smoothing=smoothing,
        n_valid=n,
        tile_batch=tile_batch,
        blocks_per_split=blocks_per_split,
    )

    out = pl.pallas_call(
        kernel,
        out_shape=jax.ShapeDtypeStruct((num_splits * 8, 128), jnp.float32),
        grid_spec=pltpu.PrefetchScalarGridSpec(
            num_scalar_prefetch=0,
            grid=(num_splits, blocks_per_split),
            in_specs=[
                pl.BlockSpec((tile_batch, c),
                             lambda p, i: (p * blocks_per_split + i, 0)),
                pl.BlockSpec((tile_batch, 1),
                             lambda p, i: (p * blocks_per_split + i, 0)),
            ],
            out_specs=pl.BlockSpec((8, 128), lambda p, i: (p, 0)),
            scratch_shapes=[pltpu.VMEM((tile_batch, 1), jnp.float32)],
        ),
        compiler_params=pltpu.CompilerParams(
            dimension_semantics=("parallel", "arbitrary"),
            vmem_limit_bytes=32 * 1024 * 1024),
    )(pred_p, tgt_p)

    partials = out[::8, 0]              # one partial sum per split
    return jnp.sum(partials) / jnp.float32(n)


def _reference(pred, target, smoothing=0.1):
    logp = jax.nn.log_softmax(pred.astype(jnp.float32), axis=-1)
    n, c = pred.shape
    one_hot = jax.nn.one_hot(target, c, dtype=jnp.float32)
    true_dist = one_hot * (1.0 - smoothing) + smoothing / c
    return jnp.mean(jnp.sum(-true_dist * logp, axis=-1))


if __name__ == "__main__":
    key = jax.random.PRNGKey(0)
    k1, k2 = jax.random.split(key)

    N, C = 16, 32
    smoothing = 0.1
    pred = jax.random.normal(k1, (N, C), dtype=jnp.float32)
    target = jax.random.randint(k2, (N,), 0, C, dtype=jnp.int32)

    loss = label_smoothing_loss(pred, target, smoothing=smoothing)
    loss = jax.block_until_ready(loss)

    ref = _reference(pred, target, smoothing=smoothing)
    assert jnp.allclose(loss, ref, atol=1e-5, rtol=1e-5), (loss, ref)
    print("KERNEL_OK")
</pallas_src>

<mosaic_0001>
module attributes {stable_mosaic.version = 11 : i64} {
  func.func @_label_smoothing_kernel(%arg0: i32, %arg1: i32, %arg2: memref<16x32xf32, #tpu.memory_space<vmem>>, %arg3: memref<16x1xi32, #tpu.memory_space<vmem>>, %arg4: memref<8x128xf32, #tpu.memory_space<vmem>>, %arg5: memref<16x1xf32, #tpu.memory_space<vmem>>) attributes {dimension_semantics = [#tpu.dimension_semantics<parallel>, #tpu.dimension_semantics<arbitrary>], iteration_bounds = array<i64: 1, 1>, scalar_prefetch = 0 : i64, scratch_operands = 1 : i64, tpu.core_type = #tpu.core_type<tc>, window_params = [{transform_indices = @transform_0, window_bounds = array<i64: 16, 32>}, {transform_indices = @transform_1, window_bounds = array<i64: 16, 1>}, {transform_indices = @transform_2, window_bounds = array<i64: 8, 128>}]} {
    %c0_i32 = arith.constant 0 : i32
    %0 = arith.cmpi eq, %arg1, %c0_i32 : i32
    %1 = arith.extui %0 : i1 to i32
    %c0_i32_0 = arith.constant 0 : i32
    %2 = arith.cmpi ne, %1, %c0_i32_0 : i32
    scf.if %2 {
      %cst_18 = arith.constant 0.000000e+00 : f32
      %45 = vector.broadcast %cst_18 : f32 to vector<16x1xf32>
      %c0_19 = arith.constant 0 : index
      %c0_20 = arith.constant 0 : index
      %46 = vector.load %arg5[%c0_19, %c0_20] : memref<16x1xf32, #tpu.memory_space<vmem>>, vector<16x1xf32>
      tpu.vector_store %arg5[%c0_19, %c0_20], %45 {strides = array<i32>} : memref<16x1xf32, #tpu.memory_space<vmem>>, vector<16x1xf32>,
    } else {
    }
    %c0 = arith.constant 0 : index
    %c0_1 = arith.constant 0 : index
    %3 = vector.load %arg2[%c0, %c0_1] : memref<16x32xf32, #tpu.memory_space<vmem>>, vector<16x32xf32>
    %cst = arith.constant dense<0xFF800000> : vector<16xf32>
    %4 = vector.multi_reduction <maximumf>, %3, %cst [1] : vector<16x32xf32> to vector<16xf32>
    %5 = vector.shape_cast %4 : vector<16xf32> to vector<16x1xf32>
    %6 = vector.broadcast %5 : vector<16x1xf32> to vector<16x32xf32>
    %7 = arith.subf %3, %6 : vector<16x32xf32>
    %8 = math.exp %7 : vector<16x32xf32>
    %cst_2 = arith.constant dense<0.000000e+00> : vector<16xf32>
    %9 = vector.multi_reduction <add>, %8, %cst_2 [1] : vector<16x32xf32> to vector<16xf32>
    %10 = vector.shape_cast %9 : vector<16xf32> to vector<16x1xf32>
    %11 = math.log %10 : vector<16x1xf32>
    %12 = arith.addf %5, %11 : vector<16x1xf32>
    %c0_3 = arith.constant 0 : index
    %c0_4 = arith.constant 0 : index
    %13 = vector.load %arg3[%c0_3, %c0_4] : memref<16x1xi32, #tpu.memory_space<vmem>>, vector<16x1xi32>
    %14 = tpu.iota {dimensions = array<i32: 1>} : vector<16x32xi32>
    %15 = vector.broadcast %13 : vector<16x1xi32> to vector<16x32xi32>
    %16 = arith.cmpi eq, %14, %15 : vector<16x32xi32>
    %cst_5 = arith.constant 0.000000e+00 : f32
    %17 = vector.broadcast %cst_5 : f32 to vector<16x32xf32>
    %18 = arith.select %16, %3, %17 : vector<16x32xi1>, vector<16x32xf32>
    %cst_6 = arith.constant dense<0.000000e+00> : vector<16xf32>
    %19 = vector.multi_reduction <add>, %18, %cst_6 [1] : vector<16x32xf32> to vector<16xf32>
    %20 = vector.shape_cast %19 : vector<16xf32> to vector<16x1xf32>
    %cst_7 = arith.constant dense<0.000000e+00> : vector<16xf32>
    %21 = vector.multi_reduction <add>, %3, %cst_7 [1] : vector<16x32xf32> to vector<16xf32>
    %22 = vector.shape_cast %21 : vector<16xf32> to vector<16x1xf32>
    %cst_8 = arith.constant 0.899999976 : f32
    %23 = vector.broadcast %cst_8 : f32 to vector<16x1xf32>
    %24 = arith.mulf %23, %20 : vector<16x1xf32>
    %25 = arith.subf %12, %24 : vector<16x1xf32>
    %cst_9 = arith.constant 3.125000e-03 : f32
    %26 = vector.broadcast %cst_9 : f32 to vector<16x1xf32>
    %27 = arith.mulf %26, %22 : vector<16x1xf32>
    %28 = arith.subf %25, %27 : vector<16x1xf32>
    %c1_i32 = arith.constant 1 : i32
    %29 = arith.muli %arg0, %c1_i32 : i32
    %30 = arith.addi %29, %arg1 : i32
    %c16_i32 = arith.constant 16 : i32
    %31 = arith.muli %30, %c16_i32 : i32
    %32 = tpu.iota {dimensions = array<i32: 0>} : vector<16x1xi32>
    %33 = vector.broadcast %31 : i32 to vector<16x1xi32>
    %34 = arith.addi %33, %32 : vector<16x1xi32>
    %c16_i32_10 = arith.constant 16 : i32
    %35 = vector.broadcast %c16_i32_10 : i32 to vector<16x1xi32>
    %36 = arith.cmpi slt, %34, %35 : vector<16x1xi32>
    %cst_11 = arith.constant 0.000000e+00 : f32
    %37 = vector.broadcast %cst_11 : f32 to vector<16x1xf32>
    %38 = arith.select %36, %28, %37 : vector<16x1xi1>, vector<16x1xf32>
    %c0_12 = arith.constant 0 : index
    %c0_13 = arith.constant 0 : index
    %39 = vector.load %arg5[%c0_12, %c0_13] : memref<16x1xf32, #tpu.memory_space<vmem>>, vector<16x1xf32>
    %40 = arith.addf %39, %38 : vector<16x1xf32>
    %c0_14 = arith.constant 0 : index
    %c0_15 = arith.constant 0 : index
    %41 = vector.load %arg5[%c0_14, %c0_15] : memref<16x1xf32, #tpu.memory_space<vmem>>, vector<16x1xf32>
    tpu.vector_store %arg5[%c0_14, %c0_15], %40 {strides = array<i32>} : memref<16x1xf32, #tpu.memory_space<vmem>>, vector<16x1xf32>,
    %c0_i32_16 = arith.constant 0 : i32
    %42 = arith.cmpi eq, %arg1, %c0_i32_16 : i32
    %43 = arith.extui %42 : i1 to i32
    %c0_i32_17 = arith.constant 0 : i32
    %44 = arith.cmpi ne, %43, %c0_i32_17 : i32
    scf.if %44 {
      %c0_18 = arith.constant 0 : index
      %c0_19 = arith.constant 0 : index
      %45 = vector.load %arg5[%c0_18, %c0_19] : memref<16x1xf32, #tpu.memory_space<vmem>>, vector<16x1xf32>
      %46 = vector.shape_cast %45 : vector<16x1xf32> to vector<1x16x1xf32>
      %cst_20 = arith.constant dense<0.000000e+00> : vector<1xf32>
      %47 = vector.multi_reduction <add>, %46, %cst_20 [1, 2] : vector<1x16x1xf32> to vector<1xf32>
      %48 = vector.shape_cast %47 : vector<1xf32> to vector<1x1x1xf32>
      %49 = vector.extract %48[0, 0, 0] : f32 from vector<1x1x1xf32>
      %50 = vector.broadcast %49 : f32 to vector<8x128xf32>
      %c0_21 = arith.constant 0 : index
      %c0_22 = arith.constant 0 : index
      %51 = vector.load %arg4[%c0_21, %c0_22] : memref<8x128xf32, #tpu.memory_space<vmem>>, vector<8x128xf32>
      tpu.vector_store %arg4[%c0_21, %c0_22], %50 {strides = array<i32>} : memref<8x128xf32, #tpu.memory_space<vmem>>, vector<8x128xf32>,
    } else {
    }
    return
  }
  func.func @transform_0(%arg0: i32, %arg1: i32) -> (i32, i32) {
    %c1_i32 = arith.constant 1 : i32
    %0 = arith.muli %arg0, %c1_i32 : i32
    %1 = arith.addi %0, %arg1 : i32
    %c0_i32 = arith.constant 0 : i32
    %c0_i32_0 = arith.constant 0 : i32
    return %1, %c0_i32 : i32, i32
  }
  func.func @transform_1(%arg0: i32, %arg1: i32) -> (i32, i32) {
    %c1_i32 = arith.constant 1 : i32
    %0 = arith.muli %arg0, %c1_i32 : i32
    %1 = arith.addi %0, %arg1 : i32
    %c0_i32 = arith.constant 0 : i32
    %c0_i32_0 = arith.constant 0 : i32
    return %1, %c0_i32 : i32, i32
  }
  func.func @transform_2(%arg0: i32, %arg1: i32) -> (i32, i32) {
    %c0_i32 = arith.constant 0 : i32
    %c0_i32_0 = arith.constant 0 : i32
    return %arg0, %c0_i32 : i32, i32
  }
}

</mosaic_0001>

<bundles_post_ra>
// kernel: tpu_custom_call.1
= control target key start
LH: loop header
LB: loop body
LE: loop exit
PB: predicated region body
PF: predicated region fallthrough
CT: control target
= control target key end

     0   :  { %vm65_vm0 = vcmask 261120   ;;  %v227_v4 = vmov 0   ;;  %s283_s0 = inlined_call_operand.vmem [shape: f32[16,32], index: 0, kind: input, shape index: {}]   ;;  %s284_s1 = inlined_call_operand.vmem [shape: s32[16,1], index: 1, kind: input, shape index: {}]   ;;  %s285_s2 = inlined_call_operand.hbm [shape: f32[8,128], index: 2, kind: output, shape index: {}]  }
   0x1   :  { %v63_v0 = vld [vmem:[%s283_s0] sm:$0xff]  ;;  %v64_v1 = vld [vmem:[%s283_s0 + $0x8] sm:$0xff]  ;;  %193 = vset.pattern.permute.xlu1 %v227_v4  ;;  %194 = vset.pattern.permute.xlu0 %v227_v4 }
   0x2   :  { %v90_v2 = vld [vmem:[%s284_s1] sm:$0xff]  ;;  %v66_v3 = vsel %vm65_vm0, %v63_v0, -inf }
   0x3   :  { %7 = vsyncpa [#allocation4], 0  ;;  %67 = vmax.xlane.f32.xlu0 %v66_v3  ;;  %95 = vperm.xlu1 %193, %v90_v2   ;;  %v69_v5 = vsel %vm65_vm0, %v64_v1, -inf  ;;  %v91_v6 = vld [vmem:[%s284_s1 + $0x8] sm:$0xff]  ;;  %v92_v11 = vlaneseq  ;;  %v110_v25 = vsel %vm65_vm0, %v63_v0, 0.0  ;;  %v113_v26 = vsel %vm65_vm0, %v64_v1, 0.0 }
   0x4   :  { %vm60_vm3 = vcmask 7168   ;;  %v228_v27 = vmov 0.0   ;;  %s229_s0 = smov [#allocation3]  }
   0x5   :  { %v93_v15 = vand.u32 127, %v92_v11  ;;  %61 = vst.msk [vmem:[#allocation2] sm:$0xff] %vm60_vm3, %v228_v27  ;;  %62 = vst.msk [vmem:[#allocation2 + $0x8] sm:$0xff] %vm60_vm3, %v228_v27  ;;  %s168_s1 = sshll.u32 %s229_s0, 4  ;;  %s169_s1 = int_to_ptr.vmem [resolvable:$true] %s168_s1 }
   0x6   :  { %s203_s18 = scalar_lea.vmem %s169_s1, 128  ;;  %p208_p1 = scmp.lt.s32.totalorder %s169_s1, %s169_s1 }
   0x7   :  { %70 = vmax.xlane.f32.xlu0 %v69_v5  ;;  %98 = vperm.xlu1 %193, %v91_v6   ;;  %p204_p0 = scmp.ne.s32.totalorder %s169_s1, %s203_s18  ;;  %p209_p2 = scmp.lt.s32.totalorder %s203_s18, %s203_s18 }
   0x9   :  { %p210_p3 = por %p209_p2, %p208_p1 }
   0xb   :  { %p211_p4 = pnand %p210_p3, %p204_p0 }
   0xc   :  { %v136_v42 = vld [vmem:[#allocation2] sm:$0xff]  ;;  %v137_v49 = vld [vmem:[#allocation2 + $0x8] sm:$0xff] }
  0x82   :  { %v96_v14 = vpop.permute.xlu1 %95 }
  0x83   :  { %vm100_vm1 = vcmp.eq.s32.totalorder %v93_v15, %v96_v14 }
  0x84   :  { %v102_v18 = vsel %vm100_vm1, %v63_v0, 0.0 }
  0x85   :  { %v104_v20 = vsel %vm65_vm0, %v102_v18, 0.0 }
  0x86   :  { %v99_v16 = vpop.permute.xlu1 %98 }
  0x87   :  { %vm101_vm2 = vcmp.eq.s32.totalorder %v93_v15, %v99_v16 }
  0x88   :  { %v103_v22 = vsel %vm101_vm2, %v64_v1, 0.0 }
  0x89   :  { %v107_v24 = vsel %vm65_vm0, %v103_v22, 0.0 }
  0x90   :  { %v68_v7 = vpop.xlane.xlu0 %67 }
  0x91   :  { %v72_v8 = vsub.f32 %v63_v0, %v68_v7 }
  0x93   :  { %v74_v9 = vmul.f32 1.442695, %v72_v8 }
  0x94   :  { %v71_v10 = vpop.xlane.xlu0 %70 }
  0x95   :  { %195 = vpow2.f32 %v74_v9  ;;  %v73_v12 = vsub.f32 %v64_v1, %v71_v10 }
  0x97   :  { %v76_v13 = vmul.f32 1.442695, %v73_v12 }
  0x99   :  { %197 = vpow2.f32 %v76_v13 }
  0x9f   :  { %v196_v17 = vpop.eup %195 }
  0xa0   :  { %v78_v19 = vsel %vm65_vm0, %v196_v17, 0.0 }
  0xa1   :  { %79 = vadd.xlane.f32.xlu0 %v78_v19 }
  0xa3   :  { %v198_v21 = vpop.eup %197 }
  0xa4   :  { %v81_v23 = vsel %vm65_vm0, %v198_v21, 0.0 }
  0xa5   :  { %105 = vadd.xlane.f32.xlu0 %v104_v20  ;;  %82 = vadd.xlane.f32.xlu1 %v81_v23 }
  0xa9   :  { %108 = vadd.xlane.f32.xlu0 %v107_v24 }
  0xad   :  { %111 = vadd.xlane.f32.xlu0 %v110_v25 }
  0xb1   :  { %114 = vadd.xlane.f32.xlu0 %v113_v26 }
 0x12e   :  { %v80_v28 = vpop.xlane.xlu0 %79 }
 0x12f   :  { %199 = vlog2.f32 %v80_v28 }
 0x132   :  { %v83_v29 = vpop.xlane.xlu1 %82  ;;  %v106_v30 = vpop.xlane.xlu0 %105 }
 0x133   :  { %201 = vlog2.f32 %v83_v29  ;;  %v116_v36 = vmul.f32 0.9, %v106_v30 }
 0x136   :  { %v109_v31 = vpop.xlane.xlu0 %108 }
 0x137   :  { %v117_v44 = vmul.f32 0.9, %v109_v31 }
 0x139   :  { %v200_v32 = vpop.eup %199 }
 0x13a   :  { %v85_v33 = vmul.f32 0.6931472, %v200_v32  ;;  %v112_v34 = vpop.xlane.xlu0 %111 }
 0x13b   :  { %v120_v37 = vmul.f32 0.003125, %v112_v34 }
 0x13c   :  { %v88_v35 = vadd.f32 %v85_v33, %v68_v7 }
 0x13d   :  { %v202_v38 = vpop.eup %201 }
 0x13e   :  { %v87_v39 = vmul.f32 0.6931472, %v202_v38  ;;  %v118_v40 = vsub.f32 %v88_v35, %v116_v36  ;;  %v115_v41 = vpop.xlane.xlu0 %114 }
 0x13f   :  { %v121_v46 = vmul.f32 0.003125, %v115_v41 }
 0x140   :  { %v89_v43 = vadd.f32 %v87_v39, %v71_v10  ;;  %v122_v45 = vsub.f32 %v118_v40, %v120_v37 }
 0x142   :  { %v119_v47 = vsub.f32 %v89_v43, %v117_v44  ;;  %v138_v48 = vadd.f32 %v136_v42, %v122_v45 }
 0x144   :  { %141 = vst.msk [vmem:[#allocation2] sm:$0xff] %vm60_vm3, %v138_v48  ;;  %v123_v50 = vsub.f32 %v119_v47, %v121_v46 }
 0x146   :  { %v139_v51 = vadd.f32 %v137_v49, %v123_v50 }
 0x148   :  { %142 = vst.msk [vmem:[#allocation2 + $0x8] sm:$0xff] %vm60_vm3, %v139_v51 }
 0x14b   :  { %v146_v52 = vld [vmem:[#allocation2] sm:$0xff] }
 0x14c   :  { %v148_v54 = vsel %vm60_vm3, %v146_v52, 0.0 }
 0x14f   :  { %v147_v53 = vld [vmem:[#allocation2 + $0x8] sm:$0xff] }
 0x150   :  { %v149_v55 = vsel %vm60_vm3, %v147_v53, 0.0 }
 0x151   :  { %v150_v56 = vadd.f32 %v149_v55, %v148_v54 }
 0x153   :  { %151 = vadd.xlane.f32.xlu0 %v150_v56 }
 0x1e0   :  { %v152_v57 = vpop.xlane.xlu0 %151 }
 0x1e1   :  { %v153_v58 = vrot.slane %v152_v57, 4 }
 0x1e3   :  { %v154_v59 = vadd.f32 %v153_v58, %v152_v57 }
 0x1e5   :  { %v155_v60 = vrot.slane %v154_v59, 2 }
 0x1e7   :  { %v156_v61 = vadd.f32 %v155_v60, %v154_v59 }
 0x1e9   :  { %v157_v62 = vrot.slane %v156_v61, 1 }
 0x1eb   :  { %v158_v63 = vadd.f32 %v157_v62, %v156_v61 }
 0x1ed   :  { %188 = vpush %v158_v63 }
 0x21e   :  { %s189_s17 = spop %188 }
 0x21f   :  { %v160_v0 = vstv %s189_s17 }
 0x220   :  { %161 = vst [vmem:[#allocation3] sm:$0xff] %v160_v0 }
 0x221   :  { %214 = shalt.err (!%p211_p4)
}
 0x222   :  { %s215_s21 = scalar_lea.hbm %s285_s2, 128 }
 0x223   :  { %p216_p5 = scmp.ne.s32.totalorder %s285_s2, %s215_s21  ;;  %p219_p6 = scmp.lt.u32.totalorder %s215_s21, %s285_s2 }
 0x225   :  { %p221_p7 = pnand %p219_p6, %p216_p5 }
 0x227   :  { %224 = shalt.err (!%p221_p7)
}
 0x228   :  { %171 = dma.vmem_to_hbm [thread:$0]  %s169_s1, 128, %s285_s2, [#allocation4]  }
 0x229   :  { %225 = dma.done.wait [#allocation4], 128  }
 0x22a   :  { %226 = vsyncadd [#allocation4], 4294967168 }
 0x22b   :  { %175 = vsyncpa [#allocation4], 1 }

</bundles_post_ra>
